<compile_context>
chip_gen: v7x
topology: tpu7x:2x2x1
jax: 0.10.0
libtpu: 0.0.40
codegen_flags: <defaults>
</compile_context>

<pallas_src>
import jax
import jax.numpy as jnp
from jax import lax
from jax.experimental import pallas as pl
from jax.experimental.pallas import tpu as pltpu

KSIZE = 4
STRIDE = 2
PADDING = 1
BN_EPS = 1e-5
DROP_P = 0.5
LANE = 128

# ----------------------------------------------------------------------------
# Portable counter-based PRNG (add / xor / rotate only -> lowers everywhere).
# TODO(synk): on real TPU hardware pltpu.prng_seed / prng_random_bits would be
# cheaper, but they have no CPU/interpret lowering, so we use this ARX hash.
# ----------------------------------------------------------------------------
_ARX_ROT = (13, 15, 26, 6, 17, 29, 16, 24, 13, 15, 26, 6)


def _rotl32(x, r):
    # logical rotate-left on int32: arithmetic >> plus low-bit mask emulates
    # the logical right shift (avoids unsigned dtypes entirely).
    return (x << r) | ((x >> (32 - r)) & ((1 << r) - 1))


def _counter_hash(x0, x1, seed):
    """Threefry-style mix of two int32 counters with an int32 key -> int32."""
    k0 = seed
    k1 = seed ^ jnp.int32(0x1BD11BDA)
    k2 = jnp.int32(0x7F4A7C15)
    keys = (k0, k1, k2)
    x0 = x0 + k0
    x1 = x1 + k1
    for i, r in enumerate(_ARX_ROT):
        x0 = x0 + x1
        x1 = _rotl32(x1, r)
        x1 = x1 ^ x0
        if (i + 1) % 4 == 0:            # key injection every 4 rounds
            j = (i + 1) // 4
            x0 = x0 + keys[j % 3]
            x1 = x1 + keys[(j + 1) % 3] + jnp.int32(j)
    return x0 ^ x1


# ----------------------------------------------------------------------------
# Kernels
# ----------------------------------------------------------------------------
def _stats_kernel(patches_ref, w_ref, sum_ref, sumsq_ref):
    """Pass 1: conv tile (bf16 MXU, f32 acc) -> per-channel sum / sum-of-sq."""
    @pl.when((pl.program_id(0) == 0) & (pl.program_id(1) == 0))
    def _init():
        sum_ref[...] = jnp.zeros(sum_ref.shape, sum_ref.dtype)
        sumsq_ref[...] = jnp.zeros(sumsq_ref.shape, sumsq_ref.dtype)

    conv = jnp.dot(patches_ref[...], w_ref[...],
                   preferred_element_type=jnp.float32)           # (tm, Cpad)
    sum_ref[...] += jnp.sum(conv, axis=0, keepdims=True)
    sumsq_ref[...] += jnp.sum(conv * conv, axis=0, keepdims=True)


def _apply_kernel(seed_ref, patches_ref, w_ref, scale_ref, shift_ref, out_ref):
    """Pass 2: recompute conv tile, folded BN affine, ReLU, dropout, store."""
    conv = jnp.dot(patches_ref[...], w_ref[...],
                   preferred_element_type=jnp.float32)           # (tm, Cpad)
    x = jnp.maximum(conv * scale_ref[...] + shift_ref[...], 0.0)

    tm, cpad = out_ref.shape
    # Global element indices -> unique dropout decision per element & per tile.
    row0 = (pl.program_id(0) * pl.num_programs(1) + pl.program_id(1)) * tm
    rows = lax.broadcasted_iota(jnp.int32, (tm, cpad), 0) + row0
    cols = lax.broadcasted_iota(jnp.int32, (tm, cpad), 1)
    bits = _counter_hash(rows, cols, seed_ref[0])
    u = ((bits >> 8) & ((1 << 23) - 1)).astype(jnp.float32) * (1.0 / (1 << 23))
    keep = u < (1.0 - DROP_P)
    out_ref[...] = jnp.where(keep, x * (1.0 / (1.0 - DROP_P)),
                             0.0).astype(out_ref.dtype)


# ----------------------------------------------------------------------------
# Wrapper
# ----------------------------------------------------------------------------
def _pick_block_m(m_phase, target):
    for cand in (2048, 1024, 512, 256, 128, 64, 32, 16, 8):
        if cand <= target and m_phase % cand == 0:
            return cand
    return m_phase  # fall back to the whole phase in one tile


def decoder_block_forward(x_nchw, w_t, bias, gamma, beta, seed, *, block_m=1024):
    """Decoder_Block forward (apply_batch_norm=True, apply_dropout=True).

    x_nchw: (N, Cin, H, W) f32;  w_t: (Cin, Cout, 4, 4) ConvTranspose2d weight;
    bias/gamma/beta: (Cout,);  seed: (1,) int32 dropout seed.
    Returns (N, Cout, 2H, 2W) f32 (NCHW, like the PyTorch module).
    """
    del bias  # cancels exactly under training-mode BatchNorm (mean subtraction)
    n, cin, h, w = x_nchw.shape
    cout = w_t.shape[1]
    cpad = ((cout + LANE - 1) // LANE) * LANE
    kphase = 4 * cin                       # 2x2 taps per output phase
    m_phase = n * h * w                    # rows per phase
    m_total = 4 * m_phase                  # == N * 2H * 2W

    # ---- sub-pixel (phase) decomposition of the stride-2 transposed conv ----
    x_nhwc = jnp.transpose(x_nchw, (0, 2, 3, 1)).astype(jnp.bfloat16)
    xp = jnp.pad(x_nhwc, ((0, 0), (1, 1), (1, 1), (0, 0)))
    w_bf = w_t.astype(jnp.bfloat16)

    patch_phases, w_phases = [], []
    for ph_h in (0, 1):
        for ph_w in (0, 1):
            taps, wrows = [], []
            for dh in (0, 1):
                for dw in (0, 1):
                    taps.append(
                        xp[:, ph_h + dh:ph_h + dh + h, ph_w + dw:ph_w + dw + w, :])
                    wrows.append(w_bf[:, :, 3 - ph_h - 2 * dh, 3 - ph_w - 2 * dw])
            patch_phases.append(jnp.stack(taps, axis=3).reshape(m_phase, kphase))
            w_phases.append(jnp.stack(wrows, axis=0).reshape(kphase, cout))
    patches = jnp.stack(patch_phases, axis=0)                  # (4, Mp, K) bf16
    wmats = jnp.pad(jnp.stack(w_phases, axis=0),               # (4, K, Cpad)
                    ((0, 0), (0, 0), (0, cpad - cout)))

    tm = _pick_block_m(m_phase, block_m)
    num_m = m_phase // tm
    grid = (4, num_m)

    vmem_limit = int(2 * (tm * kphase * 2 + kphase * cpad * 2 + tm * cpad * 4)
                     + (4 << 20))
    vmem_limit = max(8 << 20, min(vmem_limit, 64 << 20))
    flops = 2 * m_total * kphase * cpad
    in_bytes = int(patches.size) * 2 + int(wmats.size) * 2

    patches_spec = pl.BlockSpec((None, tm, kphase), lambda p, m: (p, m, 0))
    weight_spec = pl.BlockSpec((None, kphase, cpad), lambda p, m: (p, 0, 0))
    chan_spec = pl.BlockSpec((1, cpad), lambda p, m: (0, 0))

    # ---- pass 1: per-channel sums (grid-wide accumulation into outputs) ----
    sums, sumsqs = pl.pallas_call(
        _stats_kernel,
        out_shape=(jax.ShapeDtypeStruct((1, cpad), jnp.float32),
                   jax.ShapeDtypeStruct((1, cpad), jnp.float32)),
        grid=grid,
        in_specs=[patches_spec, weight_spec],
        out_specs=(chan_spec, chan_spec),
        compiler_params=pltpu.CompilerParams(
            dimension_semantics=("arbitrary", "arbitrary"),
            vmem_limit_bytes=vmem_limit),
        cost_estimate=pl.CostEstimate(flops=flops, transcendentals=0,
                                      bytes_accessed=int(in_bytes + 8 * cpad)),
    )(patches, wmats)

    # ---- fold training-mode BN into one per-channel scale & shift ----
    mean = sums / m_total
    var = jnp.maximum(sumsqs / m_total - mean * mean, 0.0)     # biased, as torch
    gamma_p = jnp.pad(gamma.astype(jnp.float32), (0, cpad - cout)).reshape(1, cpad)
    beta_p = jnp.pad(beta.astype(jnp.float32), (0, cpad - cout)).reshape(1, cpad)
    scale = gamma_p * lax.rsqrt(var + BN_EPS)
    shift = beta_p - mean * scale

    # ---- pass 2: recompute conv, normalize, ReLU, dropout ----
    out_phases = pl.pallas_call(
        _apply_kernel,
        out_shape=jax.ShapeDtypeStruct((4, m_phase, cpad), jnp.float32),
        grid=grid,
        in_specs=[pl.BlockSpec(memory_space=pltpu.MemorySpace.SMEM),  # seed
                  patches_spec, weight_spec, chan_spec, chan_spec],
        out_specs=pl.BlockSpec((None, tm, cpad), lambda p, m: (p, m, 0)),
        compiler_params=pltpu.CompilerParams(
            dimension_semantics=("parallel", "parallel"),
            vmem_limit_bytes=vmem_limit),
        cost_estimate=pl.CostEstimate(
            flops=flops, transcendentals=0,
            bytes_accessed=int(in_bytes + m_total * cpad * 4)),
    )(seed, patches, wmats, scale, shift)

    # ---- reassemble phases -> slice lane padding -> NCHW (PyTorch layout) ----
    out = out_phases.reshape(2, 2, n, h, w, cpad)[..., :cout]
    out = jnp.transpose(out, (2, 3, 0, 4, 1, 5)).reshape(n, 2 * h, 2 * w, cout)
    # TODO(synk): keep NHWC if the next layer can consume it (saves a transpose).
    return jnp.transpose(out, (0, 3, 1, 2))


# ----------------------------------------------------------------------------
# Pure-JAX reference (no dropout) for validation
# ----------------------------------------------------------------------------
def _reference_no_dropout(x_nchw, w_t, bias, gamma, beta):
    """convT + bias + training-mode BN + ReLU.  Inputs routed through bf16 like
    the kernel's MXU operands so the check isolates kernel correctness."""
    xq = x_nchw.astype(jnp.bfloat16).astype(jnp.float32)
    wq = w_t.astype(jnp.bfloat16).astype(jnp.float32)
    w_conv = jnp.transpose(wq[:, :, ::-1, ::-1], (1, 0, 2, 3))  # (Cout,Cin,KH,KW)
    q = KSIZE - 1 - PADDING
    conv = lax.conv_general_dilated(
        xq, w_conv, window_strides=(1, 1), padding=((q, q), (q, q)),
        lhs_dilation=(STRIDE, STRIDE),
        dimension_numbers=('NCHW', 'OIHW', 'NCHW'),
        precision=lax.Precision.HIGHEST)
    conv = conv + bias[None, :, None, None]          # cancels under BN below
    mean = conv.mean(axis=(0, 2, 3), keepdims=True)
    var = ((conv - mean) ** 2).mean(axis=(0, 2, 3), keepdims=True)
    out = (gamma[None, :, None, None] * (conv - mean) * lax.rsqrt(var + BN_EPS)
           + beta[None, :, None, None])
    return jnp.maximum(out, 0.0)


if __name__ == "__main__":
    N, CIN, COUT, H, W = 2, 4, 8, 16, 16
    key = jax.random.PRNGKey(0)
    kx, kw_, kb = jax.random.split(key, 3)

    x = jax.random.normal(kx, (N, CIN, H, W), dtype=jnp.float32)
    w_t = 0.2 * jax.random.normal(kw_, (CIN, COUT, KSIZE, KSIZE), jnp.float32)
    bias = 0.05 * jax.random.normal(kb, (COUT,), jnp.float32)
    gamma = jnp.ones((COUT,), jnp.float32)            # BatchNorm2d defaults
    beta = jnp.zeros((COUT,), jnp.float32)
    seed = jnp.array([42], dtype=jnp.int32)           # dropout seed

    out = decoder_block_forward(x, w_t, bias, gamma, beta, seed, block_m=256)
    out = jax.block_until_ready(out)
    assert out.shape == (N, COUT, STRIDE * H, STRIDE * W)

    ref = _reference_no_dropout(x, w_t, bias, gamma, beta)
    kept_ok = jnp.isclose(out, 2.0 * ref, rtol=2e-3, atol=2e-3)
    dropped_ok = jnp.abs(out) <= 1e-6
    if not bool(jnp.all(kept_ok | dropped_ok)):
        bad = int(jnp.sum(~(kept_ok | dropped_ok)))
        raise AssertionError(f"Pallas kernel mismatch vs JAX reference "
                             f"({bad} bad elements)")

    # dropout sanity: among clearly-positive reference activations, ~50% kept
    pos = ref > 0.05
    n_pos = int(jnp.sum(pos))
    n_kept = int(jnp.sum(jnp.logical_and(pos, jnp.abs(out) > 1e-6)))
    frac = n_kept / max(n_pos, 1)
    if n_pos > 100 and not (0.35 < frac < 0.65):
        raise AssertionError(f"dropout keep fraction {frac:.3f} not in [0.35,0.65]")

    print("KERNEL_OK")
</pallas_src>

<mosaic_0001>
module attributes {stable_mosaic.version = 11 : i64} {
  func.func @_stats_kernel(%arg0: i32, %arg1: i32, %arg2: memref<1x256x16xbf16, #tpu.memory_space<vmem>>, %arg3: memref<1x16x128xbf16, #tpu.memory_space<vmem>>, %arg4: memref<1x128xf32, #tpu.memory_space<vmem>>, %arg5: memref<1x128xf32, #tpu.memory_space<vmem>>) attributes {dimension_semantics = [#tpu.dimension_semantics<arbitrary>, #tpu.dimension_semantics<arbitrary>], iteration_bounds = array<i64: 4, 2>, scalar_prefetch = 0 : i64, scratch_operands = 0 : i64, tpu.core_type = #tpu.core_type<tc>, window_params = [{transform_indices = @transform_0, window_bounds = array<i64: 1, 256, 16>}, {transform_indices = @transform_1, window_bounds = array<i64: 1, 16, 128>}, {pipeline_mode = #tpu.pipeline_mode<synchronous>, transform_indices = @transform_2, window_bounds = array<i64: 1, 128>}, {pipeline_mode = #tpu.pipeline_mode<synchronous>, transform_indices = @transform_3, window_bounds = array<i64: 1, 128>}]} {
    %c0_i32 = arith.constant 0 : i32
    %0 = arith.cmpi eq, %arg0, %c0_i32 : i32
    %c0_i32_0 = arith.constant 0 : i32
    %1 = arith.cmpi eq, %arg1, %c0_i32_0 : i32
    %2 = arith.andi %0, %1 : i1
    %3 = arith.extui %2 : i1 to i32
    %c0_i32_1 = arith.constant 0 : i32
    %4 = arith.cmpi ne, %3, %c0_i32_1 : i32
    scf.if %4 {
      %cst_17 = arith.constant 0.000000e+00 : f32
      %21 = vector.broadcast %cst_17 : f32 to vector<1x128xf32>
      %c0_18 = arith.constant 0 : index
      %c0_19 = arith.constant 0 : index
      %22 = vector.load %arg4[%c0_18, %c0_19] : memref<1x128xf32, #tpu.memory_space<vmem>>, vector<1x128xf32>
      tpu.vector_store %arg4[%c0_18, %c0_19], %21 {strides = array<i32>} : memref<1x128xf32, #tpu.memory_space<vmem>>, vector<1x128xf32>,
      %cst_20 = arith.constant 0.000000e+00 : f32
      %23 = vector.broadcast %cst_20 : f32 to vector<1x128xf32>
      %c0_21 = arith.constant 0 : index
      %c0_22 = arith.constant 0 : index
      %24 = vector.load %arg5[%c0_21, %c0_22] : memref<1x128xf32, #tpu.memory_space<vmem>>, vector<1x128xf32>
      tpu.vector_store %arg5[%c0_21, %c0_22], %23 {strides = array<i32>} : memref<1x128xf32, #tpu.memory_space<vmem>>, vector<1x128xf32>,
    } else {
    }
    %c0 = arith.constant 0 : index
    %c0_2 = arith.constant 0 : index
    %c0_3 = arith.constant 0 : index
    %5 = vector.load %arg2[%c0, %c0_2, %c0_3] : memref<1x256x16xbf16, #tpu.memory_space<vmem>>, vector<1x256x16xbf16>
    %6 = vector.shape_cast %5 : vector<1x256x16xbf16> to vector<256x16xbf16>
    %c0_4 = arith.constant 0 : index
    %c0_5 = arith.constant 0 : index
    %c0_6 = arith.constant 0 : index
    %7 = vector.load %arg3[%c0_4, %c0_5, %c0_6] : memref<1x16x128xbf16, #tpu.memory_space<vmem>>, vector<1x16x128xbf16>
    %8 = vector.shape_cast %7 : vector<1x16x128xbf16> to vector<16x128xbf16>
    %cst = arith.constant dense<0.000000e+00> : vector<256x128xf32>
    %9 = tpu.matmul %6, %8, %cst {dimension_numbers = #tpu.dot_dimension_numbers<[1], [0], [0], [1], [0, 0, 1, 1], [], []>} : vector<256x16xbf16>, vector<16x128xbf16>, vector<256x128xf32> -> vector<256x128xf32>
    %c0_7 = arith.constant 0 : index
    %c0_8 = arith.constant 0 : index
    %10 = vector.load %arg4[%c0_7, %c0_8] : memref<1x128xf32, #tpu.memory_space<vmem>>, vector<1x128xf32>
    %cst_9 = arith.constant dense<0.000000e+00> : vector<128xf32>
    %11 = vector.multi_reduction <add>, %9, %cst_9 [0] : vector<256x128xf32> to vector<128xf32>
    %12 = vector.shape_cast %11 : vector<128xf32> to vector<1x128xf32>
    %13 = arith.addf %10, %12 : vector<1x128xf32>
    %c0_10 = arith.constant 0 : index
    %c0_11 = arith.constant 0 : index
    %14 = vector.load %arg4[%c0_10, %c0_11] : memref<1x128xf32, #tpu.memory_space<vmem>>, vector<1x128xf32>
    tpu.vector_store %arg4[%c0_10, %c0_11], %13 {strides = array<i32>} : memref<1x128xf32, #tpu.memory_space<vmem>>, vector<1x128xf32>,
    %c0_12 = arith.constant 0 : index
    %c0_13 = arith.constant 0 : index
    %15 = vector.load %arg5[%c0_12, %c0_13] : memref<1x128xf32, #tpu.memory_space<vmem>>, vector<1x128xf32>
    %16 = arith.mulf %9, %9 : vector<256x128xf32>
    %cst_14 = arith.constant dense<0.000000e+00> : vector<128xf32>
    %17 = vector.multi_reduction <add>, %16, %cst_14 [0] : vector<256x128xf32> to vector<128xf32>
    %18 = vector.shape_cast %17 : vector<128xf32> to vector<1x128xf32>
    %19 = arith.addf %15, %18 : vector<1x128xf32>
    %c0_15 = arith.constant 0 : index
    %c0_16 = arith.constant 0 : index
    %20 = vector.load %arg5[%c0_15, %c0_16] : memref<1x128xf32, #tpu.memory_space<vmem>>, vector<1x128xf32>
    tpu.vector_store %arg5[%c0_15, %c0_16], %19 {strides = array<i32>} : memref<1x128xf32, #tpu.memory_space<vmem>>, vector<1x128xf32>,
    return
  }
  func.func @transform_0(%arg0: i32, %arg1: i32) -> (i32, i32, i32) {
    %c0_i32 = arith.constant 0 : i32
    %c0_i32_0 = arith.constant 0 : i32
    return %arg0, %arg1, %c0_i32 : i32, i32, i32
  }
  func.func @transform_1(%arg0: i32, %arg1: i32) -> (i32, i32, i32) {
    %c0_i32 = arith.constant 0 : i32
    %c0_i32_0 = arith.constant 0 : i32
    %c0_i32_1 = arith.constant 0 : i32
    return %arg0, %c0_i32, %c0_i32_0 : i32, i32, i32
  }
  func.func @transform_2(%arg0: i32, %arg1: i32) -> (i32, i32) {
    %c0_i32 = arith.constant 0 : i32
    %c0_i32_0 = arith.constant 0 : i32
    %c0_i32_1 = arith.constant 0 : i32
    return %c0_i32, %c0_i32_0 : i32, i32
  }
  func.func @transform_3(%arg0: i32, %arg1: i32) -> (i32, i32) {
    %c0_i32 = arith.constant 0 : i32
    %c0_i32_0 = arith.constant 0 : i32
    %c0_i32_1 = arith.constant 0 : i32
    return %c0_i32, %c0_i32_0 : i32, i32
  }
}

</mosaic_0001>

<bundles_post_ra>
// kernel: tpu_custom_call.1
= control target key start
LH: loop header
LB: loop body
LE: loop exit
PB: predicated region body
PF: predicated region fallthrough
CT: control target
= control target key end

     0   :  { %9 = vsyncpa [#allocation3], 0  ;;  %s1233_s0 = inlined_call_operand.vmem [shape: bf16[4,512,16], index: 0, kind: input, shape index: {}]   ;;  %s1234_s1 = inlined_call_operand.vmem [shape: bf16[4,16,128], index: 1, kind: input, shape index: {}]   ;;  %s1235_s2 = inlined_call_operand.hbm [shape: f32[1,128], index: 2, kind: output, shape index: {0}]   ;;  %s1236_s3 = inlined_call_operand.hbm [shape: f32[1,128], index: 3, kind: output, shape index: {1}]  }
   0x1   :  { %10 = vsyncpa [#allocation5], 0  ;;  %s1050_s12 = smov 0   ;;  %s1052_s13 = smov 0  }
   0x2   :  { %s1054_s14 = smov 0   ;;  %s1056_s15 = smov 0  }
   0x3   :  { %s1058_s16 = smov 0  }
   0x4 LB: > { %s753_s17 = sadd.s32 4294967295, %s1025_s16   ;;  %s25_s18 = sadd.s32 1, %s1017_s14  ;;  %s1025_s16 = sphi %s1058_s16, %s16_s16   ;;  %s1021_s15 = sphi %s1056_s15, %s1241_s15   ;;  %s1017_s14 = sphi %s1054_s14, %s1240_s14   ;;  %s1013_s13 = sphi %s1052_s13, %s1239_s13   ;;  %s1009_s12 = sphi %s1050_s12, %s1238_s12  }
   0x5   : > { %p26_p0 = scmp.ge.s32.totalorder %s25_s18, 2  ;;  %s28_s19 = sadd.s32 1, %s1021_s15 }
   0x6   : > { %p756_p1 = scmp.ge.s32.totalorder %s1025_s16, 1  ;;  %p161_p2 = scmp.lt.s32.totalorder %s1025_s16, 9 }
   0x7   : > { %s1243_s18 = smov (%p26_p0, %s25_s18), 0  ;;  %s1245_s19 = smov (!%p26_p0, %s28_s19), %s1021_s15 }
   0x8   : > { %p162_p3 = pnand %p756_p1, %p161_p2  ;;  %p30_p4 = scmp.ge.s32.totalorder %s1245_s19, 4 }
   0x9   : > { %s757_s20 = sshll.u32 (!%p162_p3), %s1009_s12, 5  ;;  %p190_p5 = scmp.lt.s32.totalorder (!%p162_p3), %s1013_s13, 3 }
   0xa   : > { %s1247_s19 = smov (%p30_p4, %s1245_s19), 0  ;;  %165 = sbr.rel (%p162_p3) target bundleno = 361 (0x169), region = 28 }
   0xb   : > { %p192_p6 = scmp.lt.s32.totalorder (!%p162_p3), %s757_s20, 63  ;;  %p205_p7 = scmp.eq.s32.totalorder (!%p162_p3), %s1013_s13, 0 }
   0xc   : > { %p206_p8 = scmp.eq.s32.totalorder (!%p162_p3), %s1009_s12, 0 }
   0xe   : > { %p207_p9 = pnand (!%p162_p3), %p206_p8, %p205_p7 }
  0x11   : > { %s1249_s13 = smov (!%p190_p5, %s1013_s13), 3  ;;  %s1251_s20 = smov (!%p192_p6, %s757_s20), 63 }
  0x12   : > { %s758_s21 = sshll.u32 %s1249_s13, 6  ;;  %s801_s22 = sshll.u32 %s1249_s13, 3  ;;  %v1027_v0 = vmov (!%p207_p9), 0.0  }
  0x13   : > { %s195_s23 = sadd.s32 %s758_s21, %s1251_s20  ;;  %s203_s26 = scalar_lea.vmem %s1234_s1, %s801_s22  ;;  %211 = vst [vmem:[#allocation2] sm:$0x1] (!%p207_p9), %v1027_v0  ;;  %212 = vst [vmem:[#allocation4] sm:$0x1] (!%p207_p9), %v1027_v0 }
  0x14   : > { %s759_s27 = sshll.u32 %s195_s23, 2  ;;  %210 = sbr.rel (%p207_p9) target bundleno = 27 (0x1b), region = 32 }
  0x15   : > { %s1096_s30 = scalar_lea.vmem %s1233_s0, %s759_s27 }
  0x1b PF: > { %v910_v1 = vld [vmem:[%s203_s26] sm:$0xff]   ;;  %vm333_vm0 = vcmask 130048   ;;  %v912_v3 = vld [vmem:[%s1096_s30 + $0x8] sm:$0xff]   ;;  %v913_v4 = vld [vmem:[%s1096_s30 + $0x10] sm:$0xff]   ;;  %s1028_s4 = smov [#allocation2]   ;;  %p1162_p10 = scmp.eq.s32.totalorder %s753_s17, 7 }
  0x1c   : > { %v911_v2 = vld [vmem:[%s1096_s30] sm:$0xff]   ;;  %819 = vmatprep.subr.bf16.mxu0 %v910_v1  ;;  %853 = vmatprep.subr.bf16.mxu1 %v910_v1  ;;  %v914_v5 = vld [vmem:[%s1096_s30 + $0x18] sm:$0xff]   ;;  %v920_v8 = vld [vmem:[%s1096_s30 + $0x48] sm:$0xff]   ;;  %s662_s5 = sshll.u32 %s1028_s4, 4  ;;  %s1029_s7 = smov [#allocation4]   ;;  %s663_s5 = int_to_ptr.vmem [resolvable:$true] %s662_s5 }
  0x1d   : > { %820 = vmatpush3.bf16.msra.mxu0 %v910_v1  ;;  %821 = vmatprep.mubr.msk.bf16.mxu0 %vm333_vm0, %v911_v2  ;;  %v915_v6 = vld [vmem:[%s1096_s30 + $0x20] sm:$0xff]   ;;  %v921_v9 = vld [vmem:[%s1096_s30 + $0x50] sm:$0xff]   ;;  %v922_v10 = vld [vmem:[%s1096_s30 + $0x58] sm:$0xff]   ;;  %s673_s8 = sshll.u32 %s1029_s7, 4  ;;  %s927_s9 = scalar_lea.vmem %s663_s5, 16  ;;  %s1166_s8 = int_to_ptr.vmem [resolvable:$true] %s673_s8 }
  0x1e   : > { %854 = vmatpush3.bf16.msra.mxu1 %v910_v1  ;;  %v919_v7 = vld [vmem:[%s1096_s30 + $0x40] sm:$0xff]   ;;  %v916_v12 = vld [vmem:[%s1096_s30 + $0x28] sm:$0xff]   ;;  %v917_v13 = vld [vmem:[%s1096_s30 + $0x30] sm:$0xff]   ;;  %p928_p11 = scmp.ne.s32.totalorder %s663_s5, %s927_s9  ;;  %s933_s10 = scalar_lea.vmem %s663_s5, 32 }
  0x1f   : > { %837 = vmatprep.mubr.msk.bf16.mxu1 %vm333_vm0, %v919_v7  ;;  %v923_v11 = vld [vmem:[%s1096_s30 + $0x60] sm:$0xff]   ;;  %v924_v14 = vld [vmem:[%s1096_s30 + $0x68] sm:$0xff]   ;;  %v925_v15 = vld [vmem:[%s1096_s30 + $0x70] sm:$0xff]   ;;  %p934_p0 = scmp.lt.s32.totalorder %s663_s5, %s663_s5  ;;  %p935_p1 = scmp.lt.s32.totalorder %s933_s10, %s927_s9 }
  0x20   : > { %822 = vmatmul.mubr.msk.bf16.vlgmr.msra.gmra.mrb[0].mxu0 %vm333_vm0, %v912_v3  ;;  %v918_v16 = vld [vmem:[%s1096_s30 + $0x38] sm:$0xff]   ;;  %p929_p12 = pnand %p928_p11, %p1162_p10 }
  0x21   : > { %825 = vmatprep.mubr.msk.bf16.mxu0 %vm333_vm0, %v913_v4  ;;  %838 = vmatmul.mubr.msk.bf16.vlgmr.msra.gmra.mrb[0].mxu1 %vm333_vm0, %v920_v8  ;;  %v926_v17 = vld [vmem:[%s1096_s30 + $0x78] sm:$0xff]   ;;  %p936_p2 = por %p935_p1, %p934_p0 }
  0x22   : > { %841 = vmatprep.mubr.msk.bf16.mxu1 %vm333_vm0, %v921_v9  ;;  %p930_p13 = pneg %p929_p12 }
  0x24   : > { %p937_p3 = pnand %p936_p2, %p930_p13 }
  0x28   : > { %826 = vmatmul.mubr.msk.bf16.gmra.mrb[4].mxu0 %vm333_vm0, %v914_v5 }
  0x29   : > { %829 = vmatprep.mubr.msk.bf16.mxu0 %vm333_vm0, %v915_v6  ;;  %842 = vmatmul.mubr.msk.bf16.gmra.mrb[4].mxu1 %vm333_vm0, %v922_v10 }
  0x2a   : > { %845 = vmatprep.mubr.msk.bf16.mxu1 %vm333_vm0, %v923_v11 }
  0x30   : > { %830 = vmatmul.mubr.msk.bf16.gmra.mrb[8].mxu0 %vm333_vm0, %v916_v12 }
  0x31   : > { %833 = vmatprep.mubr.msk.bf16.mxu0 %vm333_vm0, %v917_v13  ;;  %846 = vmatmul.mubr.msk.bf16.gmra.mrb[8].mxu1 %vm333_vm0, %v924_v14 }
  0x32   : > { %849 = vmatprep.mubr.msk.bf16.mxu1 %vm333_vm0, %v925_v15 }
  0x38   : > { %834 = vmatmul.mubr.msk.bf16.gmra.mrb[12].mxu0 %vm333_vm0, %v918_v16 }
  0x39   : > { %850 = vmatmul.mubr.msk.bf16.gmra.mrb[12].mxu1 %vm333_vm0, %v926_v17 }
  0xf3   : > { %v823_v18 = vpop.f32.mrb[0].mxu0 }
  0xf4   : > { %v416_v19 = vpop.f32.mrb[1].mxu0  ;;  %v586_v25 = vmul.f32 %v823_v18, %v823_v18  ;;  %v1130_v28 = vpop.f32.mrb[0].mxu1 }
  0xf5   : > { %v824_v20 = vpop.f32.mrb[2].mxu0  ;;  %v584_v22 = vmul.f32 %v416_v19, %v416_v19  ;;  %v1132_v29 = vpop.f32.mrb[1].mxu1 }
  0xf6   : > { %v419_v21 = vpop.f32.mrb[3].mxu0  ;;  %v587_v30 = vmul.f32 %v824_v20, %v824_v20  ;;  %v1134_v34 = vpop.f32.mrb[2].mxu1 }
  0xf7   : > { %v544_v23 = vadd.f32 %v419_v21, %v416_v19  ;;  %v585_v24 = vmul.f32 %v419_v21, %v419_v21  ;;  %v1136_v36 = vpop.f32.mrb[3].mxu1 }
  0xf9   : > { %v545_v26 = vadd.f32 %v823_v18, %v544_v23  ;;  %v616_v27 = vadd.f32 %v585_v24, %v584_v22 }
  0xfb   : > { %v617_v31 = vadd.f32 %v616_v27, %v586_v25  ;;  %v827_v32 = vpop.f32.mrb[4].mxu0  ;;  %v546_v33 = vadd.f32 %v824_v20, %v545_v26 }
  0xfc   : > { %v432_v35 = vpop.f32.mrb[5].mxu0  ;;  %v590_v45 = vmul.f32 %v827_v32, %v827_v32  ;;  %v1138_v48 = vpop.f32.mrb[4].mxu1 }
  0xfd   : > { %v547_v37 = vadd.f32 %v546_v33, %v432_v35  ;;  %v588_v38 = vmul.f32 %v432_v35, %v432_v35  ;;  %v618_v39 = vadd.f32 %v617_v31, %v587_v30  ;;  %v828_v40 = vpop.f32.mrb[6].mxu0  ;;  %v496_v49 = vpop.f32.mrb[5].mxu1  ;;  %v600_v31 = vmul.f32 %v1132_v29, %v1132_v29 }
  0xfe   : > { %v435_v41 = vpop.f32.mrb[7].mxu0  ;;  %v591_v50 = vmul.f32 %v828_v40, %v828_v40  ;;  %v1140_v54 = vpop.f32.mrb[6].mxu1 }
  0xff   : > { %v619_v42 = vadd.f32 %v618_v39, %v588_v38  ;;  %v548_v43 = vadd.f32 %v547_v37, %v435_v41  ;;  %v589_v44 = vmul.f32 %v435_v41, %v435_v41  ;;  %v499_v56 = vpop.f32.mrb[7].mxu1  ;;  %v602_v41 = vmul.f32 %v1130_v28, %v1130_v28 }
 0x101   : > { %v549_v46 = vadd.f32 %v827_v32, %v548_v43  ;;  %v620_v47 = vadd.f32 %v619_v42, %v589_v44  ;;  %v603_v44 = vmul.f32 %v1134_v34, %v1134_v34 }
 0x103   : > { %v621_v51 = vadd.f32 %v620_v47, %v590_v45  ;;  %v831_v52 = vpop.f32.mrb[8].mxu0  ;;  %v550_v53 = vadd.f32 %v828_v40, %v549_v46  ;;  %v601_v40 = vmul.f32 %v1136_v36, %v1136_v36 }
 0x104   : > { %v448_v55 = vpop.f32.mrb[9].mxu0  ;;  %v594_v1 = vmul.f32 %v831_v52, %v831_v52  ;;  %v847_v4 = vpop.f32.mrb[8].mxu1 }
 0x105   : > { %v551_v57 = vadd.f32 %v550_v53, %v448_v55  ;;  %v592_v58 = vmul.f32 %v448_v55, %v448_v55  ;;  %v622_v59 = vadd.f32 %v621_v51, %v591_v50  ;;  %v832_v60 = vpop.f32.mrb[10].mxu0  ;;  %v512_v5 = vpop.f32.mrb[9].mxu1  ;;  %v605_v53 = vmul.f32 %v499_v56, %v499_v56 }
 0x106   : > { %v451_v61 = vpop.f32.mrb[11].mxu0  ;;  %v595_v6 = vmul.f32 %v832_v60, %v832_v60  ;;  %v848_v10 = vpop.f32.mrb[10].mxu1 }
 0x107   : > { %v623_v62 = vadd.f32 %v622_v59, %v592_v58  ;;  %v552_v63 = vadd.f32 %v551_v57, %v451_v61  ;;  %v593_v0 = vmul.f32 %v451_v61, %v451_v61  ;;  %v515_v12 = vpop.f32.mrb[11].mxu1 }
 0x109   : > { %v553_v2 = vadd.f32 %v831_v52, %v552_v63  ;;  %v624_v3 = vadd.f32 %v623_v62, %v593_v0  ;;  %v609_v63 = vmul.f32 %v515_v12, %v515_v12  ;;  %v610_v0 = vmul.f32 %v847_v4, %v847_v4 }
 0x10b   : > { %v625_v7 = vadd.f32 %v624_v3, %v594_v1  ;;  %v835_v8 = vpop.f32.mrb[12].mxu0  ;;  %v554_v9 = vadd.f32 %v832_v60, %v553_v2  ;;  %v608_v60 = vmul.f32 %v512_v5, %v512_v5  ;;  %v611_v2 = vmul.f32 %v848_v10, %v848_v10 }
 0x10c   : > { %v464_v11 = vpop.f32.mrb[13].mxu0  ;;  %v598_v21 = vmul.f32 %v835_v8, %v835_v8  ;;  %v851_v24 = vpop.f32.mrb[12].mxu1 }
 0x10d   : > { %v555_v13 = vadd.f32 %v554_v9, %v464_v11  ;;  %v596_v14 = vmul.f32 %v464_v11, %v464_v11  ;;  %v626_v15 = vadd.f32 %v625_v7, %v595_v6  ;;  %v836_v16 = vpop.f32.mrb[14].mxu0  ;;  %v528_v25 = vpop.f32.mrb[13].mxu1 }
 0x10e   : > { %v467_v17 = vpop.f32.mrb[15].mxu0  ;;  %v599_v26 = vmul.f32 %v836_v16, %v836_v16  ;;  %v852_v32 = vpop.f32.mrb[14].mxu1 }
 0x10f   : > { %v627_v18 = vadd.f32 %v626_v15, %v596_v14  ;;  %v556_v19 = vadd.f32 %v555_v13, %v467_v17  ;;  %v597_v20 = vmul.f32 %v467_v17, %v467_v17  ;;  %v531_v33 = vpop.f32.mrb[15].mxu1  ;;  %v614_v14 = vmul.f32 %v851_v24, %v851_v24 }
 0x110   : > { %v613_v13 = vmul.f32 %v531_v33, %v531_v33 }
 0x111   : > { %v557_v22 = vadd.f32 %v835_v8, %v556_v19  ;;  %v628_v23 = vadd.f32 %v627_v18, %v597_v20 }
 0x113   : > { %v629_v27 = vadd.f32 %v628_v23, %v598_v21  ;;  %v558_v30 = vadd.f32 %v836_v16, %v557_v22 }
 0x115   : > { %v559_v35 = vadd.f32 %v558_v30, %v1132_v29  ;;  %v630_v37 = vadd.f32 %v629_v27, %v599_v26  ;;  %v604_v29 = vmul.f32 %v496_v49, %v496_v49  ;;  %v543_v26 = vld [vmem:[#allocation2] sm:$0x1]  ;;  %v583_v30 = vld [vmem:[#allocation4] sm:$0x1] }
 0x117   : > { %v631_v38 = vadd.f32 %v630_v37, %v600_v31  ;;  %v560_v39 = vadd.f32 %v559_v35, %v1136_v36  ;;  %v606_v36 = vmul.f32 %v1138_v48, %v1138_v48 }
 0x119   : > { %v561_v42 = vadd.f32 %v1130_v28, %v560_v39  ;;  %v632_v43 = vadd.f32 %v631_v38, %v601_v40  ;;  %v607_v28 = vmul.f32 %v1140_v54, %v1140_v54 }
 0x11b   : > { %v633_v45 = vadd.f32 %v632_v43, %v602_v41  ;;  %v562_v46 = vadd.f32 %v1134_v34, %v561_v42 }
 0x11d   : > { %v563_v47 = vadd.f32 %v562_v46, %v496_v49  ;;  %v634_v50 = vadd.f32 %v633_v45, %v603_v44 }
 0x11f   : > { %v635_v51 = vadd.f32 %v634_v50, %v604_v29  ;;  %v564_v52 = vadd.f32 %v563_v47, %v499_v56 }
 0x121   : > { %v565_v55 = vadd.f32 %v1138_v48, %v564_v52  ;;  %v636_v57 = vadd.f32 %v635_v51, %v605_v53  ;;  %v612_v48 = vmul.f32 %v528_v25, %v528_v25 }
 0x123   : > { %v637_v58 = vadd.f32 %v636_v57, %v606_v36  ;;  %v566_v59 = vadd.f32 %v1140_v54, %v565_v55 }
 0x125   : > { %v567_v34 = vadd.f32 %v566_v59, %v512_v5  ;;  %v638_v61 = vadd.f32 %v637_v58, %v607_v28  ;;  %v615_v5 = vmul.f32 %v852_v32, %v852_v32 }
 0x127   : > { %v639_v49 = vadd.f32 %v638_v61, %v608_v60  ;;  %v568_v62 = vadd.f32 %v567_v34, %v515_v12 }
 0x129   : > { %v569_v56 = vadd.f32 %v847_v4, %v568_v62  ;;  %v640_v1 = vadd.f32 %v639_v49, %v609_v63 }
 0x12b   : > { %v641_v3 = vadd.f32 %v640_v1, %v610_v0  ;;  %v570_v6 = vadd.f32 %v848_v10, %v569_v56 }
 0x12d   : > { %v571_v7 = vadd.f32 %v570_v6, %v528_v25  ;;  %v642_v8 = vadd.f32 %v641_v3, %v611_v2 }
 0x12f   : > { %v643_v9 = vadd.f32 %v642_v8, %v612_v48  ;;  %v572_v11 = vadd.f32 %v571_v7, %v531_v33 }
 0x131   : > { %v573_v54 = vadd.f32 %v851_v24, %v572_v11  ;;  %v644_v15 = vadd.f32 %v643_v9, %v613_v13 }
 0x133   : > { %v574_v16 = vadd.f32 %v852_v32, %v573_v54  ;;  %v645_v17 = vadd.f32 %v644_v15, %v614_v14 }
 0x135   : > { %v575_v12 = vrot.slane %v574_v16, 4  ;;  %v646_v18 = vadd.f32 %v645_v17, %v615_v5 }
 0x137   : > { %v576_v4 = vadd.f32 %v575_v12, %v574_v16  ;;  %v647_v19 = vrot.slane %v646_v18, 4 }
 0x139   : > { %v577_v20 = vrot.slane %v576_v4, 2  ;;  %v648_v21 = vadd.f32 %v647_v19, %v646_v18 }
 0x13b   : > { %v578_v10 = vadd.f32 %v577_v20, %v576_v4  ;;  %v649_v22 = vrot.slane %v648_v21, 2 }
 0x13d   : > { %v579_v23 = vrot.slane %v578_v10, 1  ;;  %v650_v25 = vadd.f32 %v649_v22, %v648_v21 }
 0x13f   : > { %v580_v27 = vadd.f32 %v579_v23, %v578_v10  ;;  %v651_v24 = vrot.slane %v650_v25, 1 }
 0x141   : > { %v581_v31 = vadd.f32 %v580_v27, %v543_v26  ;;  %v652_v32 = vadd.f32 %v651_v24, %v650_v25 }
 0x143   : > { %582 = vst [vmem:[#allocation2] sm:$0x1] %v581_v31  ;;  %v653_v33 = vadd.f32 %v652_v32, %v583_v30 }
 0x144   : > { %940 = shalt.err (!%p937_p3)
}
 0x145   : > { %s941_s13 = scalar_lea.hbm %s1235_s2, 16 }
 0x146   : > { %p942_p4 = scmp.ne.s32.totalorder %s1235_s2, %s941_s13  ;;  %p947_p7 = scmp.lt.u32.totalorder %s941_s13, %s1235_s2 }
 0x148   : > { %p943_p5 = pnand %p942_p4, %p1162_p10 }
 0x14a   : > { %p944_p6 = pneg %p943_p5 }
 0x14c   : > { %p949_p8 = pnand %p947_p7, %p944_p6 }
 0x14e   : > { %952 = shalt.err (!%p949_p8)
}
 0x14f   : > { %856 = dma.vmem_to_hbm [thread:$0]  (%p1162_p10), %s663_s5, 16, %s1235_s2, [#allocation3]   ;;  %654 = vst [vmem:[#allocation4] sm:$0x1] %v653_v33 }
 0x150   : > { %s953_s25 = scalar_lea.vmem %s1166_s8, 16  ;;  %s959_s26 = scalar_lea.vmem %s1166_s8, 32 }
 0x151   : > { %p954_p9 = scmp.ne.s32.totalorder %s1166_s8, %s953_s25  ;;  %p960_p13 = scmp.lt.s32.totalorder %s1166_s8, %s1166_s8 }
 0x152   : > { %p961_p0 = scmp.lt.s32.totalorder %s959_s26, %s953_s25 }
 0x153   : > { %p955_p11 = pnand %p954_p9, %p1162_p10 }
 0x154   : > { %p962_p1 = por %p961_p0, %p960_p13 }
 0x155   : > { %p956_p12 = pneg %p955_p11 }
 0x157   : > { %p963_p2 = pnand %p962_p1, %p956_p12 }
 0x159   : > { %966 = shalt.err (!%p963_p2)
}
 0x15a   : > { %s967_s29 = scalar_lea.hbm %s1236_s3, 16 }
 0x15b   : > { %p968_p3 = scmp.ne.s32.totalorder %s1236_s3, %s967_s29  ;;  %p973_p6 = scmp.lt.u32.totalorder %s967_s29, %s1236_s3 }
 0x15d   : > { %p969_p4 = pnand %p968_p3, %p1162_p10 }
 0x15f   : > { %p970_p5 = pneg %p969_p4 }
 0x161   : > { %p975_p7 = pnand %p973_p6, %p970_p5 }
 0x163   : > { %978 = shalt.err (!%p975_p7)
}
 0x164   : > { %858 = dma.vmem_to_hbm [thread:$0]  (%p1162_p10), %s1166_s8, 16, %s1236_s3, [#allocation5]  }
 0x165   : > { %1000 = dma.done.wait (%p1162_p10), [#allocation3], 16  }
 0x166   : > { %1002 = vsyncadd (%p1162_p10), [#allocation3], 4294967280 }
 0x167   : > { %1004 = dma.done.wait (%p1162_p10), [#allocation5], 16  }
 0x168   : > { %1006 = vsyncadd (%p1162_p10), [#allocation5], 4294967280 }
 0x169 PF: > { %s16_s16 = sadd.s32 1, %s1025_s16   ;;  %s1238_s12 = smov %s1017_s14 }
 0x16a   : > { %p13_p8 = scmp.ge.s32.totalorder %s16_s16, 10   ;;  %s1239_s13 = smov %s1021_s15 }
 0x16b   : > { %s1240_s14 = smov %s1243_s18  ;;  %s1241_s15 = smov %s1247_s19 }
 0x16c   :  { %15 = sbr.rel (!%p13_p8) target bundleno = 4 (0x4), region = 70 }
 0x173   :  { %690 = vsyncpa [#allocation3], 1 }
 0x174   :  { %692 = vsyncpa [#allocation3 + $0x1], 1 }
 0x175   :  { %693 = vsyncpa [#allocation5], 1 }

</bundles_post_ra>
